<compile_context>
chip_gen: v6e
topology: v6e:2x2x1
jax: 0.10.0
libtpu: 0.0.40
codegen_flags: <defaults>
</compile_context>

<pallas_src>
import functools

import jax
import jax.numpy as jnp
from jax.experimental import pallas as pl
from jax.experimental.pallas import tpu as pltpu


def _lstm_chunk_kernel(xp_ref, whh_ref, h0_ref, c0_ref, out_ref, h_sc, c_sc):
    """One T-chunk of the LSTM recurrence.

    xp_ref:  (Tc, B, 4H)  precomputed input projection (x @ W_ih^T + b), gate
                          columns already permuted to [i, f, o, g]
    whh_ref: (H, 4H)      W_hh^T, columns permuted to [i, f, o, g]
    h0_ref:  (B, H)       initial hidden state (used only on grid step 0)
    c0_ref:  (B, H)       initial cell state   (used only on grid step 0)
    out_ref: (Tc, B, H)   hidden states for this chunk
    h_sc:    (B, H)       VMEM scratch carrying h across grid steps
    c_sc:    (B, H)       VMEM scratch carrying c across grid steps
    """
    Tc = xp_ref.shape[0]
    H = h0_ref.shape[-1]

    # Initialize the carried state on the first chunk only.
    @pl.when(pl.program_id(0) == 0)
    def _():
        h_sc[...] = h0_ref[...]
        c_sc[...] = c0_ref[...]

    whh = whh_ref[...]                       # hoisted weight load, reused every step

    def step(t, carry):
        h_prev, c_prev = carry

        # gates = (x_t @ W_ih^T + b) + h_prev @ W_hh^T   -> (B, 4H), order [i, f, o, g]
        gates = xp_ref[t] + jnp.dot(h_prev, whh, preferred_element_type=jnp.float32)

        # One sigmoid over the contiguous [i, f, o] block, one tanh for g.
        sig = jax.nn.sigmoid(gates[:, : 3 * H])
        g_g = jnp.tanh(gates[:, 3 * H:])
        i_g = sig[:, 0 * H:1 * H]
        f_g = sig[:, 1 * H:2 * H]
        o_g = sig[:, 2 * H:3 * H]

        c_new = f_g * c_prev + i_g * g_g
        h_new = o_g * jnp.tanh(c_new)

        out_ref[t] = h_new.astype(out_ref.dtype)
        return (h_new, c_new)

    # Serial recurrence over this chunk; h/c live in vregs through the carry.
    # Full unroll only when the per-chunk trip count is short.
    unroll = True if Tc <= 8 else 8
    h_last, c_last = jax.lax.fori_loop(
        0, Tc, step, (h_sc[...], c_sc[...]), unroll=unroll)

    # Persist the carried state for the next chunk.
    h_sc[...] = h_last
    c_sc[...] = c_last


def _pick_time_chunk(T, B, H, budget_bytes=4 << 20):
    """Largest divisor of T whose double-buffered xp+out chunks fit the budget."""
    per_step = 2 * (B * 4 * H + B * H) * 4     # 2 buffers, f32
    max_tc = max(1, budget_bytes // per_step)
    tc = 1
    for d in range(1, T + 1):
        if T % d == 0 and d <= max_tc:
            tc = d
    return tc


@functools.partial(jax.jit, static_argnames=("time_chunk",))
def rec_model_forward(out_conv, w_ih, w_hh, b_ih, b_hh, h0, c0, *, time_chunk=None):
    """RecModel forward.

    out_conv: (B, C, T) float32 conv features (same layout the PyTorch module gets)
    w_ih:     (4H, C)   PyTorch LSTM weight_ih_l0
    w_hh:     (4H, H)   PyTorch LSTM weight_hh_l0
    b_ih,b_hh:(4H,)     PyTorch LSTM biases
    h0, c0:   (B, H)    initial states (PyTorch draws these from randn each forward;
                        here they are deterministic explicit inputs)
    """
    B, C, T = out_conv.shape
    H = w_hh.shape[1]                        # hidden size = 2*C

    Tc = time_chunk if time_chunk is not None else _pick_time_chunk(T, B, H)
    assert T % Tc == 0, (T, Tc)

    # --- Weight prep (free, done once per call under jit): permute the 4H gate
    # rows from PyTorch [i, f, g, o] to [i, f, o, g] and transpose. -------------
    perm = jnp.concatenate([
        jnp.arange(0 * H, 1 * H),            # i
        jnp.arange(1 * H, 2 * H),            # f
        jnp.arange(3 * H, 4 * H),            # o
        jnp.arange(2 * H, 3 * H),            # g
    ])
    wih_t = jnp.take(w_ih, perm, axis=0).T   # (C, 4H)
    whh_t = jnp.take(w_hh, perm, axis=0).T   # (H, 4H)
    bias = jnp.take(b_ih + b_hh, perm)       # (4H,)

    # (B, C, T) --transpose(2,1)--> (B, T, C) --time-major--> (T, B, C)
    x_seq = jnp.transpose(out_conv, (2, 0, 1))

    # --- Hoisted input projection as a plain XLA GEMM: (T, B, C) @ (C, 4H) + b. ---
    xp = jnp.einsum("tbc,cg->tbg", x_seq, wih_t,
                    preferred_element_type=jnp.float32) + bias          # (T, B, 4H)

    out_tbh = pl.pallas_call(
        _lstm_chunk_kernel,
        out_shape=jax.ShapeDtypeStruct((T, B, H), jnp.float32),
        grid=(T // Tc,),
        in_specs=[
            pl.BlockSpec((Tc, B, 4 * H), lambda i: (i, 0, 0)),   # xp chunk (pipelined)
            pl.BlockSpec((H, 4 * H), lambda i: (0, 0)),          # W_hh^T (resident)
            pl.BlockSpec((B, H), lambda i: (0, 0)),              # h0
            pl.BlockSpec((B, H), lambda i: (0, 0)),              # c0
        ],
        out_specs=pl.BlockSpec((Tc, B, H), lambda i: (i, 0, 0)), # out chunk (pipelined)
        scratch_shapes=[
            pltpu.VMEM((B, H), jnp.float32),                     # carried h
            pltpu.VMEM((B, H), jnp.float32),                     # carried c
        ],
        compiler_params=pltpu.CompilerParams(
            dimension_semantics=("arbitrary",),                  # serial recurrence axis
            vmem_limit_bytes=32 * 1024 * 1024,
        ),
    )(xp, whh_t, h0, c0)

    # back to batch-first (B, T, H), matching PyTorch LSTM(batch_first=True)
    return jnp.transpose(out_tbh, (1, 0, 2))


def _reference_lstm(out_conv, w_ih, w_hh, b_ih, b_hh, h0, c0):
    """Pure-JAX reference (lax.scan) with PyTorch gate order, for verification."""
    x_seq = jnp.transpose(out_conv, (2, 0, 1))   # (T, B, C)
    H = w_hh.shape[1]
    wih_t = w_ih.T
    whh_t = w_hh.T
    bias = b_ih + b_hh

    def step(carry, x_t):
        h, c = carry
        gates = x_t @ wih_t + h @ whh_t + bias
        i = jax.nn.sigmoid(gates[:, 0 * H:1 * H])
        f = jax.nn.sigmoid(gates[:, 1 * H:2 * H])
        g = jnp.tanh(gates[:, 2 * H:3 * H])
        o = jax.nn.sigmoid(gates[:, 3 * H:4 * H])
        c_new = f * c + i * g
        h_new = o * jnp.tanh(c_new)
        return (h_new, c_new), h_new

    (_, _), hs = jax.lax.scan(step, (h0, c0), x_seq)
    return jnp.transpose(hs, (1, 0, 2))


if __name__ == "__main__":
    # Small shapes consistent with the module: out_channel_conv=4, batch=2, seq=8.
    B, C, T = 2, 4, 8
    H = C * 2  # RecModel.mul_hidden = 2

    key = jax.random.PRNGKey(0)
    k_x, k_wih, k_whh, k_bih, k_bhh, k_h0, k_c0 = jax.random.split(key, 7)

    # Input from the (fictional) conv stage: (B, C, T), as forward() expects.
    out_conv = jax.random.normal(k_x, (B, C, T), dtype=jnp.float32)

    # Deterministic LSTM parameters (PyTorch-style uniform(-1/sqrt(H), 1/sqrt(H))).
    bound = 1.0 / jnp.sqrt(jnp.float32(H))
    w_ih = jax.random.uniform(k_wih, (4 * H, C), jnp.float32, -bound, bound)
    w_hh = jax.random.uniform(k_whh, (4 * H, H), jnp.float32, -bound, bound)
    b_ih = jax.random.uniform(k_bih, (4 * H,), jnp.float32, -bound, bound)
    b_hh = jax.random.uniform(k_bhh, (4 * H,), jnp.float32, -bound, bound)

    # PyTorch __init_hiddens uses th.randn each forward; made deterministic here
    # by passing explicit (deterministically sampled) h0/c0 as kernel inputs.
    h0 = jax.random.normal(k_h0, (B, H), dtype=jnp.float32)
    c0 = jax.random.normal(k_c0, (B, H), dtype=jnp.float32)

    # time_chunk=4 -> grid=(2,): exercises the cross-chunk h/c carry + pipelining.
    out = rec_model_forward(out_conv, w_ih, w_hh, b_ih, b_hh, h0, c0, time_chunk=4)
    out = jax.block_until_ready(out)

    ref = _reference_lstm(out_conv, w_ih, w_hh, b_ih, b_hh, h0, c0)
    assert out.shape == (B, T, H), out.shape
    assert jnp.allclose(out, ref, rtol=1e-5, atol=1e-5), "mismatch vs reference"

    print("KERNEL_OK")
</pallas_src>

<mosaic_0001>
module attributes {stable_mosaic.version = 11 : i64} {
  func.func @_lstm_chunk_kernel(%arg0: i32, %arg1: memref<4x2x32xf32, #tpu.memory_space<vmem>>, %arg2: memref<8x32xf32, #tpu.memory_space<vmem>>, %arg3: memref<2x8xf32, #tpu.memory_space<vmem>>, %arg4: memref<2x8xf32, #tpu.memory_space<vmem>>, %arg5: memref<4x2x8xf32, #tpu.memory_space<vmem>>, %arg6: memref<2x8xf32, #tpu.memory_space<vmem>>, %arg7: memref<2x8xf32, #tpu.memory_space<vmem>>) attributes {dimension_semantics = [#tpu.dimension_semantics<arbitrary>], iteration_bounds = array<i64: 2>, scalar_prefetch = 0 : i64, scratch_operands = 2 : i64, tpu.core_type = #tpu.core_type<tc>, window_params = [{transform_indices = @transform_0, window_bounds = array<i64: 4, 2, 32>}, {pipeline_mode = #tpu.pipeline_mode<synchronous>, transform_indices = @transform_1, window_bounds = array<i64: 8, 32>}, {pipeline_mode = #tpu.pipeline_mode<synchronous>, transform_indices = @transform_2, window_bounds = array<i64: 2, 8>}, {pipeline_mode = #tpu.pipeline_mode<synchronous>, transform_indices = @transform_3, window_bounds = array<i64: 2, 8>}, {transform_indices = @transform_4, window_bounds = array<i64: 4, 2, 8>}]} {
    %c0_i32 = arith.constant 0 : i32
    %0 = arith.cmpi eq, %arg0, %c0_i32 : i32
    %1 = arith.extui %0 : i1 to i32
    %c0_i32_0 = arith.constant 0 : i32
    %2 = arith.cmpi ne, %1, %c0_i32_0 : i32
    scf.if %2 {
      %c0_34 = arith.constant 0 : index
      %c0_35 = arith.constant 0 : index
      %108 = vector.load %arg3[%c0_34, %c0_35] : memref<2x8xf32, #tpu.memory_space<vmem>>, vector<2x8xf32>
      %c0_36 = arith.constant 0 : index
      %c0_37 = arith.constant 0 : index
      %109 = vector.load %arg6[%c0_36, %c0_37] : memref<2x8xf32, #tpu.memory_space<vmem>>, vector<2x8xf32>
      tpu.vector_store %arg6[%c0_36, %c0_37], %108 {strides = array<i32>} : memref<2x8xf32, #tpu.memory_space<vmem>>, vector<2x8xf32>,
      %c0_38 = arith.constant 0 : index
      %c0_39 = arith.constant 0 : index
      %110 = vector.load %arg4[%c0_38, %c0_39] : memref<2x8xf32, #tpu.memory_space<vmem>>, vector<2x8xf32>
      %c0_40 = arith.constant 0 : index
      %c0_41 = arith.constant 0 : index
      %111 = vector.load %arg7[%c0_40, %c0_41] : memref<2x8xf32, #tpu.memory_space<vmem>>, vector<2x8xf32>
      tpu.vector_store %arg7[%c0_40, %c0_41], %110 {strides = array<i32>} : memref<2x8xf32, #tpu.memory_space<vmem>>, vector<2x8xf32>,
    } else {
    }
    %c0 = arith.constant 0 : index
    %c0_1 = arith.constant 0 : index
    %3 = vector.load %arg2[%c0, %c0_1] : memref<8x32xf32, #tpu.memory_space<vmem>>, vector<8x32xf32>
    %c0_2 = arith.constant 0 : index
    %c0_3 = arith.constant 0 : index
    %4 = vector.load %arg6[%c0_2, %c0_3] : memref<2x8xf32, #tpu.memory_space<vmem>>, vector<2x8xf32>
    %c0_4 = arith.constant 0 : index
    %c0_5 = arith.constant 0 : index
    %5 = vector.load %arg7[%c0_4, %c0_5] : memref<2x8xf32, #tpu.memory_space<vmem>>, vector<2x8xf32>
    %c0_i32_6 = arith.constant 0 : i32
    %6 = arith.index_cast %c0_i32_6 : i32 to index
    %c0_7 = arith.constant 0 : index
    %c0_8 = arith.constant 0 : index
    %7 = vector.load %arg1[%6, %c0_7, %c0_8] : memref<4x2x32xf32, #tpu.memory_space<vmem>>, vector<1x2x32xf32>
    %8 = vector.shape_cast %7 : vector<1x2x32xf32> to vector<2x32xf32>
    %cst = arith.constant dense<0.000000e+00> : vector<2x32xf32>
    %9 = tpu.matmul %4, %3, %cst {dimension_numbers = #tpu.dot_dimension_numbers<[1], [0], [0], [1], [0, 0, 1, 1], [], []>} : vector<2x8xf32>, vector<8x32xf32>, vector<2x32xf32> -> vector<2x32xf32>
    %10 = arith.addf %8, %9 : vector<2x32xf32>
    %11 = vector.extract_strided_slice %10 {offsets = [0, 0], sizes = [2, 24], strides = [1, 1]} : vector<2x32xf32> to vector<2x24xf32>
    %12 = arith.negf %11 : vector<2x24xf32>
    %13 = math.exp %12 : vector<2x24xf32>
    %cst_9 = arith.constant 1.000000e+00 : f32
    %14 = vector.broadcast %cst_9 : f32 to vector<2x24xf32>
    %15 = arith.addf %14, %13 : vector<2x24xf32>
    %16 = arith.divf %14, %15 : vector<2x24xf32>
    %17 = vector.extract_strided_slice %10 {offsets = [0, 24], sizes = [2, 8], strides = [1, 1]} : vector<2x32xf32> to vector<2x8xf32>
    %18 = math.tanh %17 : vector<2x8xf32>
    %19 = vector.extract_strided_slice %16 {offsets = [0, 0], sizes = [2, 8], strides = [1, 1]} : vector<2x24xf32> to vector<2x8xf32>
    %20 = vector.extract_strided_slice %16 {offsets = [0, 8], sizes = [2, 8], strides = [1, 1]} : vector<2x24xf32> to vector<2x8xf32>
    %21 = vector.extract_strided_slice %16 {offsets = [0, 16], sizes = [2, 8], strides = [1, 1]} : vector<2x24xf32> to vector<2x8xf32>
    %22 = arith.mulf %20, %5 : vector<2x8xf32>
    %23 = arith.mulf %19, %18 : vector<2x8xf32>
    %24 = arith.addf %22, %23 : vector<2x8xf32>
    %25 = math.tanh %24 : vector<2x8xf32>
    %26 = arith.mulf %21, %25 : vector<2x8xf32>
    %27 = arith.index_cast %c0_i32_6 : i32 to index
    %c0_10 = arith.constant 0 : index
    %c0_11 = arith.constant 0 : index
    %28 = vector.load %arg5[%27, %c0_10, %c0_11] : memref<4x2x8xf32, #tpu.memory_space<vmem>>, vector<1x2x8xf32>
    %29 = vector.shape_cast %28 : vector<1x2x8xf32> to vector<2x8xf32>
    %30 = vector.shape_cast %26 : vector<2x8xf32> to vector<1x2x8xf32>
    tpu.vector_store %arg5[%27, %c0_10, %c0_11], %30 {strides = array<i32>} : memref<4x2x8xf32, #tpu.memory_space<vmem>>, vector<1x2x8xf32>,
    %c1_i32 = arith.constant 1 : i32
    %31 = arith.index_cast %c1_i32 : i32 to index
    %c0_12 = arith.constant 0 : index
    %c0_13 = arith.constant 0 : index
    %32 = vector.load %arg1[%31, %c0_12, %c0_13] : memref<4x2x32xf32, #tpu.memory_space<vmem>>, vector<1x2x32xf32>
    %33 = vector.shape_cast %32 : vector<1x2x32xf32> to vector<2x32xf32>
    %cst_14 = arith.constant dense<0.000000e+00> : vector<2x32xf32>
    %34 = tpu.matmul %26, %3, %cst_14 {dimension_numbers = #tpu.dot_dimension_numbers<[1], [0], [0], [1], [0, 0, 1, 1], [], []>} : vector<2x8xf32>, vector<8x32xf32>, vector<2x32xf32> -> vector<2x32xf32>
    %35 = arith.addf %33, %34 : vector<2x32xf32>
    %36 = vector.extract_strided_slice %35 {offsets = [0, 0], sizes = [2, 24], strides = [1, 1]} : vector<2x32xf32> to vector<2x24xf32>
    %37 = arith.negf %36 : vector<2x24xf32>
    %38 = math.exp %37 : vector<2x24xf32>
    %cst_15 = arith.constant 1.000000e+00 : f32
    %39 = vector.broadcast %cst_15 : f32 to vector<2x24xf32>
    %40 = arith.addf %39, %38 : vector<2x24xf32>
    %41 = arith.divf %39, %40 : vector<2x24xf32>
    %42 = vector.extract_strided_slice %35 {offsets = [0, 24], sizes = [2, 8], strides = [1, 1]} : vector<2x32xf32> to vector<2x8xf32>
    %43 = math.tanh %42 : vector<2x8xf32>
    %44 = vector.extract_strided_slice %41 {offsets = [0, 0], sizes = [2, 8], strides = [1, 1]} : vector<2x24xf32> to vector<2x8xf32>
    %45 = vector.extract_strided_slice %41 {offsets = [0, 8], sizes = [2, 8], strides = [1, 1]} : vector<2x24xf32> to vector<2x8xf32>
    %46 = vector.extract_strided_slice %41 {offsets = [0, 16], sizes = [2, 8], strides = [1, 1]} : vector<2x24xf32> to vector<2x8xf32>
    %47 = arith.mulf %45, %24 : vector<2x8xf32>
    %48 = arith.mulf %44, %43 : vector<2x8xf32>
    %49 = arith.addf %47, %48 : vector<2x8xf32>
    %50 = math.tanh %49 : vector<2x8xf32>
    %51 = arith.mulf %46, %50 : vector<2x8xf32>
    %52 = arith.index_cast %c1_i32 : i32 to index
    %c0_16 = arith.constant 0 : index
    %c0_17 = arith.constant 0 : index
    %53 = vector.load %arg5[%52, %c0_16, %c0_17] : memref<4x2x8xf32, #tpu.memory_space<vmem>>, vector<1x2x8xf32>
    %54 = vector.shape_cast %53 : vector<1x2x8xf32> to vector<2x8xf32>
    %55 = vector.shape_cast %51 : vector<2x8xf32> to vector<1x2x8xf32>
    tpu.vector_store %arg5[%52, %c0_16, %c0_17], %55 {strides = array<i32>} : memref<4x2x8xf32, #tpu.memory_space<vmem>>, vector<1x2x8xf32>,
    %c2_i32 = arith.constant 2 : i32
    %56 = arith.index_cast %c2_i32 : i32 to index
    %c0_18 = arith.constant 0 : index
    %c0_19 = arith.constant 0 : index
    %57 = vector.load %arg1[%56, %c0_18, %c0_19] : memref<4x2x32xf32, #tpu.memory_space<vmem>>, vector<1x2x32xf32>
    %58 = vector.shape_cast %57 : vector<1x2x32xf32> to vector<2x32xf32>
    %cst_20 = arith.constant dense<0.000000e+00> : vector<2x32xf32>
    %59 = tpu.matmul %51, %3, %cst_20 {dimension_numbers = #tpu.dot_dimension_numbers<[1], [0], [0], [1], [0, 0, 1, 1], [], []>} : vector<2x8xf32>, vector<8x32xf32>, vector<2x32xf32> -> vector<2x32xf32>
    %60 = arith.addf %58, %59 : vector<2x32xf32>
    %61 = vector.extract_strided_slice %60 {offsets = [0, 0], sizes = [2, 24], strides = [1, 1]} : vector<2x32xf32> to vector<2x24xf32>
    %62 = arith.negf %61 : vector<2x24xf32>
    %63 = math.exp %62 : vector<2x24xf32>
    %cst_21 = arith.constant 1.000000e+00 : f32
    %64 = vector.broadcast %cst_21 : f32 to vector<2x24xf32>
    %65 = arith.addf %64, %63 : vector<2x24xf32>
    %66 = arith.divf %64, %65 : vector<2x24xf32>
    %67 = vector.extract_strided_slice %60 {offsets = [0, 24], sizes = [2, 8], strides = [1, 1]} : vector<2x32xf32> to vector<2x8xf32>
    %68 = math.tanh %67 : vector<2x8xf32>
    %69 = vector.extract_strided_slice %66 {offsets = [0, 0], sizes = [2, 8], strides = [1, 1]} : vector<2x24xf32> to vector<2x8xf32>
    %70 = vector.extract_strided_slice %66 {offsets = [0, 8], sizes = [2, 8], strides = [1, 1]} : vector<2x24xf32> to vector<2x8xf32>
    %71 = vector.extract_strided_slice %66 {offsets = [0, 16], sizes = [2, 8], strides = [1, 1]} : vector<2x24xf32> to vector<2x8xf32>
    %72 = arith.mulf %70, %49 : vector<2x8xf32>
    %73 = arith.mulf %69, %68 : vector<2x8xf32>
    %74 = arith.addf %72, %73 : vector<2x8xf32>
    %75 = math.tanh %74 : vector<2x8xf32>
    %76 = arith.mulf %71, %75 : vector<2x8xf32>
    %77 = arith.index_cast %c2_i32 : i32 to index
    %c0_22 = arith.constant 0 : index
    %c0_23 = arith.constant 0 : index
    %78 = vector.load %arg5[%77, %c0_22, %c0_23] : memref<4x2x8xf32, #tpu.memory_space<vmem>>, vector<1x2x8xf32>
    %79 = vector.shape_cast %78 : vector<1x2x8xf32> to vector<2x8xf32>
    %80 = vector.shape_cast %76 : vector<2x8xf32> to vector<1x2x8xf32>
    tpu.vector_store %arg5[%77, %c0_22, %c0_23], %80 {strides = array<i32>} : memref<4x2x8xf32, #tpu.memory_space<vmem>>, vector<1x2x8xf32>,
    %c3_i32 = arith.constant 3 : i32
    %81 = arith.index_cast %c3_i32 : i32 to index
    %c0_24 = arith.constant 0 : index
    %c0_25 = arith.constant 0 : index
    %82 = vector.load %arg1[%81, %c0_24, %c0_25] : memref<4x2x32xf32, #tpu.memory_space<vmem>>, vector<1x2x32xf32>
    %83 = vector.shape_cast %82 : vector<1x2x32xf32> to vector<2x32xf32>
    %cst_26 = arith.constant dense<0.000000e+00> : vector<2x32xf32>
    %84 = tpu.matmul %76, %3, %cst_26 {dimension_numbers = #tpu.dot_dimension_numbers<[1], [0], [0], [1], [0, 0, 1, 1], [], []>} : vector<2x8xf32>, vector<8x32xf32>, vector<2x32xf32> -> vector<2x32xf32>
    %85 = arith.addf %83, %84 : vector<2x32xf32>
    %86 = vector.extract_strided_slice %85 {offsets = [0, 0], sizes = [2, 24], strides = [1, 1]} : vector<2x32xf32> to vector<2x24xf32>
    %87 = arith.negf %86 : vector<2x24xf32>
    %88 = math.exp %87 : vector<2x24xf32>
    %cst_27 = arith.constant 1.000000e+00 : f32
    %89 = vector.broadcast %cst_27 : f32 to vector<2x24xf32>
    %90 = arith.addf %89, %88 : vector<2x24xf32>
    %91 = arith.divf %89, %90 : vector<2x24xf32>
    %92 = vector.extract_strided_slice %85 {offsets = [0, 24], sizes = [2, 8], strides = [1, 1]} : vector<2x32xf32> to vector<2x8xf32>
    %93 = math.tanh %92 : vector<2x8xf32>
    %94 = vector.extract_strided_slice %91 {offsets = [0, 0], sizes = [2, 8], strides = [1, 1]} : vector<2x24xf32> to vector<2x8xf32>
    %95 = vector.extract_strided_slice %91 {offsets = [0, 8], sizes = [2, 8], strides = [1, 1]} : vector<2x24xf32> to vector<2x8xf32>
    %96 = vector.extract_strided_slice %91 {offsets = [0, 16], sizes = [2, 8], strides = [1, 1]} : vector<2x24xf32> to vector<2x8xf32>
    %97 = arith.mulf %95, %74 : vector<2x8xf32>
    %98 = arith.mulf %94, %93 : vector<2x8xf32>
    %99 = arith.addf %97, %98 : vector<2x8xf32>
    %100 = math.tanh %99 : vector<2x8xf32>
    %101 = arith.mulf %96, %100 : vector<2x8xf32>
    %102 = arith.index_cast %c3_i32 : i32 to index
    %c0_28 = arith.constant 0 : index
    %c0_29 = arith.constant 0 : index
    %103 = vector.load %arg5[%102, %c0_28, %c0_29] : memref<4x2x8xf32, #tpu.memory_space<vmem>>, vector<1x2x8xf32>
    %104 = vector.shape_cast %103 : vector<1x2x8xf32> to vector<2x8xf32>
    %105 = vector.shape_cast %101 : vector<2x8xf32> to vector<1x2x8xf32>
    tpu.vector_store %arg5[%102, %c0_28, %c0_29], %105 {strides = array<i32>} : memref<4x2x8xf32, #tpu.memory_space<vmem>>, vector<1x2x8xf32>,
    %c4_i32 = arith.constant 4 : i32
    %c0_30 = arith.constant 0 : index
    %c0_31 = arith.constant 0 : index
    %106 = vector.load %arg6[%c0_30, %c0_31] : memref<2x8xf32, #tpu.memory_space<vmem>>, vector<2x8xf32>
    tpu.vector_store %arg6[%c0_30, %c0_31], %101 {strides = array<i32>} : memref<2x8xf32, #tpu.memory_space<vmem>>, vector<2x8xf32>,
    %c0_32 = arith.constant 0 : index
    %c0_33 = arith.constant 0 : index
    %107 = vector.load %arg7[%c0_32, %c0_33] : memref<2x8xf32, #tpu.memory_space<vmem>>, vector<2x8xf32>
    tpu.vector_store %arg7[%c0_32, %c0_33], %99 {strides = array<i32>} : memref<2x8xf32, #tpu.memory_space<vmem>>, vector<2x8xf32>,
    return
  }
  func.func @transform_0(%arg0: i32) -> (i32, i32, i32) {
    %c0_i32 = arith.constant 0 : i32
    %c0_i32_0 = arith.constant 0 : i32
    %c0_i32_1 = arith.constant 0 : i32
    return %arg0, %c0_i32, %c0_i32_0 : i32, i32, i32
  }
  func.func @transform_1(%arg0: i32) -> (i32, i32) {
    %c0_i32 = arith.constant 0 : i32
    %c0_i32_0 = arith.constant 0 : i32
    %c0_i32_1 = arith.constant 0 : i32
    return %c0_i32, %c0_i32_0 : i32, i32
  }
  func.func @transform_2(%arg0: i32) -> (i32, i32) {
    %c0_i32 = arith.constant 0 : i32
    %c0_i32_0 = arith.constant 0 : i32
    %c0_i32_1 = arith.constant 0 : i32
    return %c0_i32, %c0_i32_0 : i32, i32
  }
  func.func @transform_3(%arg0: i32) -> (i32, i32) {
    %c0_i32 = arith.constant 0 : i32
    %c0_i32_0 = arith.constant 0 : i32
    %c0_i32_1 = arith.constant 0 : i32
    return %c0_i32, %c0_i32_0 : i32, i32
  }
  func.func @transform_4(%arg0: i32) -> (i32, i32, i32) {
    %c0_i32 = arith.constant 0 : i32
    %c0_i32_0 = arith.constant 0 : i32
    %c0_i32_1 = arith.constant 0 : i32
    return %arg0, %c0_i32, %c0_i32_0 : i32, i32, i32
  }
}

</mosaic_0001>

<bundles_post_ra>
// kernel: rec_model_forward.1
= control target key start
LH: loop header
LB: loop body
LE: loop exit
PB: predicated region body
PF: predicated region fallthrough
CT: control target
= control target key end

     0   :  { %s839_s15 = smov 0   ;;  %s908_s0 = inlined_call_operand.vmem [shape: f32[8,2,32], index: 0, kind: input, shape index: {}]   ;;  %s909_s1 = inlined_call_operand.vmem [shape: f32[8,32], index: 1, kind: input, shape index: {}]   ;;  %s910_s2 = inlined_call_operand.vmem [shape: f32[2,8], index: 2, kind: input, shape index: {}]   ;;  %s911_s3 = inlined_call_operand.vmem [shape: f32[2,8], index: 3, kind: input, shape index: {}]   ;;  %s912_s4 = inlined_call_operand.vmem [shape: f32[8,2,8], index: 4, kind: output, shape index: {}]  }
   0x1 LB: > { %s700_s16 = sadd.s32 4294967295, %s806_s15   ;;  %p704_p0 = scmp.ge.s32.totalorder %s806_s15, 1  ;;  %s806_s15 = sphi %s839_s15, %s14_s15  }
   0x2   : > { %p163_p1 = scmp.lt.s32.totalorder %s806_s15, 3 }
   0x4   : > { %p164_p2 = pnand %p704_p0, %p163_p1 }
   0x5   : > { %s705_s17 = sshll.u32 (!%p164_p2), %s700_s16, 2  ;;  %p709_p4 = scmp.ne.s32.totalorder (!%p164_p2), %s700_s16, 0 }
   0x6   : > { %167 = sbr.rel (%p164_p2) target bundleno = 2782 (0xade), region = 36  ;;  %p190_p3 = scmp.lt.s32.totalorder (!%p164_p2), %s705_s17, 7 }
   0xb   : > { %s914_s17 = smov (!%p190_p3, %s705_s17), 7  ;;  %204 = sbr.rel (%p709_p4) target bundleno = 19 (0x13), region = 40 }
   0xc   : > { %s706_s18 = sshll.u32 %s914_s17, 1 }
   0xd   : > { %s850_s21 = scalar_lea.vmem %s908_s0, %s706_s18  ;;  %s855_s24 = scalar_lea.vmem %s912_s4, %s706_s18 }
  0x10   : > { %v205_v0 = vld [vmem:[%s910_s2] sm:$0x3]  ;;  %vm206_vm0 = vcmask 58368  }
  0x11   : > { %v208_v1 = vld [vmem:[%s911_s3] sm:$0x3]  ;;  %207 = vst.msk [vmem:[#allocation2] sm:$0x3] %vm206_vm0, %v205_v0 }
  0x12   : > { %209 = vst.msk [vmem:[#allocation3] sm:$0x3] %vm206_vm0, %v208_v1 }
  0x13 PF: > { %v210_v2 = vld [vmem:[%s909_s1] sm:$0xff]  ;;  %vm214_vm1 = vcmask 64512   ;;  %v808_v4 = vmov 0.0   ;;  %vm809_vm2 = vmmov 0   ;;  %s810_s5 = smov 104   ;;  %s811_s6 = smov 8  }
  0x14   : > { %734 = vmatprep.subr.mxu0 %v808_v4  ;;  %736 = vmatprep.mubr.msk.f32.mxu0 %vm809_vm2, %v808_v4  ;;  %v213_v5 = vld [vmem:[%s850_s21] sm:$0x3]  ;;  %s812_s7 = smov 112   ;;  %vm321_vm3 = vcmask 58368   ;;  %v712_v25 = vld [vmem:[%s850_s21 + $0x2] sm:$0x3] }
  0x15   : > { %735 = vmatpush3.msra.mxu0 %v210_v2  ;;  %739 = vmatprep.subr.mxu1 %v808_v4  ;;  %v716_v43 = vld [vmem:[%s850_s21 + $0x4] sm:$0x3]  ;;  %v720_v61 = vld [vmem:[%s850_s21 + $0x6] sm:$0x3]  ;;  %s813_s8 = smov 120  }
  0x16   : > { %740 = vmatpush3.msra.mxu1 %v210_v2  ;;  %741 = vmatprep.mubr.msk.f32.mxu1 %vm809_vm2, %v808_v4 }
  0x17   : > { %744 = vmatprep.subr.mxu0 %v808_v4  ;;  %749 = vmatprep.subr.mxu1 %v808_v4 }
  0x18   : > { %v211_v3 = vld [vmem:[#allocation2] sm:$0x3] }
  0x19   : > { %737 = vmatmul.mubr.msk.f32.vlgmr.msra.gmra.mxu0 %vm214_vm1, %v211_v3  ;;  %v212_v10 = vld [vmem:[#allocation3] sm:$0x3] }
  0x1a   : > { %745 = vmatpush3.msra.mxu0 %v210_v2  ;;  %746 = vmatprep.mubr.msk.f32.mxu0 %vm809_vm2, %v808_v4 }
  0xd9   : > { %v284_v6 = vpop.f32.mrf.mxu0 }
  0xda   : > { %v288_v7 = vadd.f32 %v284_v6, %v213_v5 }
  0xdb   : > { %v738_v8 = vpop.f32.mrf.mxu0 }
  0xdc   : > { %768 = vtanh.f32 %v288_v7  ;;  %v711_v11 = vmul.f32 -1.442695, %v288_v7 }
  0xde   : > { %770 = vpow2.f32 %v711_v11 }
  0xe9   : > { %v769_v9 = vpop.eup %768 }
  0xea   : > { %302 = vrot.lane.b32.xlu0 %v769_v9, %s810_s5 }
  0xeb   : > { %v771_v12 = vpop.eup %770 }
  0xec   : > { %v292_v13 = vadd.f32 1.0, %v771_v12 }
  0xee   : > { %297 = vrot.lane.b32.xlu0 %v212_v10, %s811_s6  ;;  %772 = vrcp.f32 %v292_v13 }
  0xfb   : > { %v773_v14 = vpop.eup %772 }
 0x15c   : > { %v303_v15 = vpop.permute.xlu0 %302 }
 0x15d   : > { %v305_v16 = vmul.f32 %v773_v14, %v303_v15 }
 0x15f   : > { %307 = vrot.lane.b32.xlu1 %v305_v16, %s811_s6 }
 0x160   : > { %v298_v17 = vpop.permute.xlu0 %297 }
 0x161   : > { %v300_v18 = vmul.f32 %v773_v14, %v298_v17 }
 0x1d1   : > { %v308_v19 = vpop.permute.xlu1 %307 }
 0x1d2   : > { %v310_v20 = vadd.f32 %v308_v19, %v300_v18 }
 0x1d4   : > { %774 = vtanh.f32 %v310_v20 }
 0x1e1   : > { %v775_v21 = vpop.eup %774 }
 0x1e2   : > { %313 = vrot.lane.b32.xlu1 %v775_v21, %s811_s6 }
 0x254   : > { %v314_v22 = vpop.permute.xlu1 %313 }
 0x255   : > { %v316_v23 = vmul.f32 %v773_v14, %v314_v22 }
 0x257   : > { %318 = vrot.lane.b32.xlu0 %v316_v23, %s812_s7 }
 0x2c9   : > { %v319_v24 = vpop.permute.xlu0 %318 }
 0x2ca   : > { %322 = vst.msk [vmem:[%s855_s24] sm:$0x3] %vm321_vm3, %v319_v24  ;;  %742 = vmatmul.mubr.msk.f32.vlgmr.msra.gmra.mxu1 %vm214_vm1, %v319_v24 }
 0x2cb   : > { %750 = vmatpush3.msra.mxu1 %v210_v2  ;;  %751 = vmatprep.mubr.msk.f32.mxu1 %vm809_vm2, %v808_v4 }
 0x38a   : > { %v393_v26 = vpop.f32.mrf.mxu1 }
 0x38b   : > { %v397_v27 = vadd.f32 %v712_v25, %v393_v26 }
 0x38c   : > { %v743_v28 = vpop.f32.mrf.mxu1 }
 0x38d   : > { %776 = vtanh.f32 %v397_v27  ;;  %v714_v30 = vmul.f32 -1.442695, %v397_v27 }
 0x38f   : > { %778 = vpow2.f32 %v714_v30 }
 0x39a   : > { %v777_v29 = vpop.eup %776 }
 0x39b   : > { %407 = vrot.lane.b32.xlu1 %v777_v29, %s810_s5 }
 0x39c   : > { %v779_v31 = vpop.eup %778 }
 0x39d   : > { %v401_v32 = vadd.f32 1.0, %v779_v31 }
 0x39f   : > { %780 = vrcp.f32 %v401_v32 }
 0x3ac   : > { %v781_v33 = vpop.eup %780 }
 0x3ad   : > { %v405_v36 = vmul.f32 %v781_v33, %v310_v20 }
 0x40d   : > { %v408_v34 = vpop.permute.xlu1 %407 }
 0x40e   : > { %v410_v35 = vmul.f32 %v781_v33, %v408_v34 }
 0x410   : > { %412 = vrot.lane.b32.xlu0 %v410_v35, %s811_s6 }
 0x482   : > { %v413_v37 = vpop.permute.xlu0 %412 }
 0x483   : > { %v415_v38 = vadd.f32 %v413_v37, %v405_v36 }
 0x485   : > { %782 = vtanh.f32 %v415_v38 }
 0x492   : > { %v783_v39 = vpop.eup %782 }
 0x493   : > { %418 = vrot.lane.b32.xlu1 %v783_v39, %s811_s6 }
 0x505   : > { %v419_v40 = vpop.permute.xlu1 %418 }
 0x506   : > { %v421_v41 = vmul.f32 %v781_v33, %v419_v40 }
 0x508   : > { %423 = vrot.lane.b32.xlu0 %v421_v41, %s812_s7 }
 0x57a   : > { %v424_v42 = vpop.permute.xlu0 %423 }
 0x57b   : > { %715 = vst.msk [vmem:[%s855_s24 + $0x2] sm:$0x3] %vm321_vm3, %v424_v42  ;;  %747 = vmatmul.mubr.msk.f32.vlgmr.msra.gmra.mxu0 %vm214_vm1, %v424_v42 }
 0x63b   : > { %v498_v44 = vpop.f32.mrf.mxu0 }
 0x63c   : > { %v502_v45 = vadd.f32 %v716_v43, %v498_v44 }
 0x63d   : > { %v748_v46 = vpop.f32.mrf.mxu0 }
 0x63e   : > { %784 = vtanh.f32 %v502_v45  ;;  %v718_v48 = vmul.f32 -1.442695, %v502_v45 }
 0x640   : > { %786 = vpow2.f32 %v718_v48 }
 0x64b   : > { %v785_v47 = vpop.eup %784 }
 0x64c   : > { %512 = vrot.lane.b32.xlu1 %v785_v47, %s810_s5 }
 0x64d   : > { %v787_v49 = vpop.eup %786 }
 0x64e   : > { %v506_v50 = vadd.f32 1.0, %v787_v49 }
 0x650   : > { %788 = vrcp.f32 %v506_v50 }
 0x65d   : > { %v789_v51 = vpop.eup %788 }
 0x65e   : > { %v510_v54 = vmul.f32 %v789_v51, %v415_v38 }
 0x6be   : > { %v513_v52 = vpop.permute.xlu1 %512 }
 0x6bf   : > { %v515_v53 = vmul.f32 %v789_v51, %v513_v52 }
 0x6c1   : > { %517 = vrot.lane.b32.xlu0 %v515_v53, %s811_s6 }
 0x733   : > { %v518_v55 = vpop.permute.xlu0 %517 }
 0x734   : > { %v520_v56 = vadd.f32 %v518_v55, %v510_v54 }
 0x736   : > { %790 = vtanh.f32 %v520_v56 }
 0x743   : > { %v791_v57 = vpop.eup %790 }
 0x744   : > { %523 = vrot.lane.b32.xlu1 %v791_v57, %s811_s6 }
 0x7b6   : > { %v524_v58 = vpop.permute.xlu1 %523 }
 0x7b7   : > { %v526_v59 = vmul.f32 %v789_v51, %v524_v58 }
 0x7b9   : > { %528 = vrot.lane.b32.xlu0 %v526_v59, %s812_s7 }
 0x82b   : > { %v529_v60 = vpop.permute.xlu0 %528 }
 0x82c   : > { %719 = vst.msk [vmem:[%s855_s24 + $0x4] sm:$0x3] %vm321_vm3, %v529_v60  ;;  %752 = vmatmul.mubr.msk.f32.vlgmr.msra.gmra.mxu1 %vm214_vm1, %v529_v60 }
 0x8ec   : > { %v603_v62 = vpop.f32.mrf.mxu1 }
 0x8ed   : > { %v607_v63 = vadd.f32 %v720_v61, %v603_v62 }
 0x8ee   : > { %v753_v0 = vpop.f32.mrf.mxu1 }
 0x8ef   : > { %792 = vtanh.f32 %v607_v63  ;;  %v722_v2 = vmul.f32 -1.442695, %v607_v63 }
 0x8f1   : > { %794 = vpow2.f32 %v722_v2 }
 0x8fc   : > { %v793_v1 = vpop.eup %792 }
 0x8fd   : > { %617 = vrot.lane.b32.xlu1 %v793_v1, %s810_s5 }
 0x8fe   : > { %v795_v3 = vpop.eup %794 }
 0x8ff   : > { %v611_v4 = vadd.f32 1.0, %v795_v3 }
 0x901   : > { %796 = vrcp.f32 %v611_v4 }
 0x90e   : > { %v797_v5 = vpop.eup %796 }
 0x90f   : > { %v615_v8 = vmul.f32 %v797_v5, %v520_v56 }
 0x96f   : > { %v618_v6 = vpop.permute.xlu1 %617 }
 0x970   : > { %v620_v7 = vmul.f32 %v797_v5, %v618_v6 }
 0x972   : > { %622 = vrot.lane.b32.xlu0 %v620_v7, %s811_s6 }
 0x9e4   : > { %v623_v9 = vpop.permute.xlu0 %622 }
 0x9e5   : > { %v625_v10 = vadd.f32 %v623_v9, %v615_v8 }
 0x9e7   : > { %798 = vtanh.f32 %v625_v10 }
 0x9f4   : > { %v799_v11 = vpop.eup %798 }
 0x9f5   : > { %628 = vrot.lane.b32.xlu1 %v799_v11, %s811_s6 }
 0x9f9   : > { %640 = vrot.lane.b32.xlu1 %v625_v10, %s813_s8 }
 0xa67   : > { %v629_v12 = vpop.permute.xlu1 %628 }
 0xa68   : > { %v631_v13 = vmul.f32 %v797_v5, %v629_v12 }
 0xa6a   : > { %633 = vrot.lane.b32.xlu0 %v631_v13, %s812_s7 }
 0xa6b   : > { %v641_v14 = vpop.permute.xlu1 %640 }
 0xa6c   : > { %643 = vst.msk [vmem:[#allocation3] sm:$0x3] %vm321_vm3, %v641_v14 }
 0xadc   : > { %v634_v15 = vpop.permute.xlu0 %633 }
 0xadd   : > { %723 = vst.msk [vmem:[%s855_s24 + $0x6] sm:$0x3] %vm321_vm3, %v634_v15  ;;  %638 = vst.msk [vmem:[#allocation2] sm:$0x3] %vm321_vm3, %v634_v15 }
 0xade PF: > { %s14_s15 = sadd.s32 1, %s806_s15  }
 0xadf   : > { %p11_p5 = scmp.ge.s32.totalorder %s14_s15, 4  }
 0xae1   :  { %13 = sbr.rel (!%p11_p5) target bundleno = 1 (0x1), region = 76 }

</bundles_post_ra>
